<compile_context>
chip_gen: v7x
topology: tpu7x:2x2x1
jax: 0.10.0
libtpu: 0.0.40
codegen_flags: <defaults>
</compile_context>

<pallas_src>
import functools

import jax
import jax.numpy as jnp
from jax.experimental import pallas as pl
from jax.experimental.pallas import tpu as pltpu


def _round_up(x: int, m: int) -> int:
    return ((x + m - 1) // m) * m


def _glu_kernel(x_ref, w_ref, b_ref, o_ref, acc_ref):
    """Grid = (M tiles, N tiles, K tiles). K is the reduction axis (last).

    w_ref holds the fused weight tile [W1_tile | W2_tile] of shape (tk, 2*tn),
    so both projections share one MXU matmul against the same LHS tile.
    """
    k = pl.program_id(2)

    @pl.when(k == 0)
    def _():
        acc_ref[...] = jnp.zeros_like(acc_ref)

    acc_ref[...] += jnp.dot(
        x_ref[...], w_ref[...], preferred_element_type=jnp.float32
    )

    @pl.when(k == pl.num_programs(2) - 1)
    def _():
        tn = o_ref.shape[-1]
        acc = acc_ref[...] + b_ref[...].astype(jnp.float32)
        lin = acc[:, :tn]                      # W1 projection
        gate = jax.nn.sigmoid(acc[:, tn:])     # W2 projection -> EUP sigmoid
        o_ref[...] = (gate * lin).astype(o_ref.dtype)


@functools.partial(jax.jit, static_argnames=("tm", "tn", "tk"))
def glu_forward(x, w1, b1, w2, b2, *, tm=256, tn=256, tk=512):
    """x: (*, in_dim) -> (*, h_dim).

    Weights are stored pre-transposed relative to torch.nn.Linear:
    w1, w2: (in_dim, h_dim); b1, b2: (h_dim,).
    """
    in_dim = x.shape[-1]
    h_dim = w1.shape[-1]
    lead = x.shape[:-1]
    xf = x.reshape(-1, in_dim)
    M = xf.shape[0]

    # Effective tile sizes: clamp to the (aligned) problem size, keep
    # sublane/lane alignment (8 for M tiles, 128 for N/K tiles).
    tm_e = min(tm, _round_up(M, 8))
    tn_e = min(tn, _round_up(h_dim, 128))
    tk_e = min(tk, _round_up(in_dim, 128))

    M_p = _round_up(M, tm_e)
    N_p = _round_up(h_dim, tn_e)
    K_p = _round_up(in_dim, tk_e)
    nM, nN, nK = M_p // tm_e, N_p // tn_e, K_p // tk_e

    # Zero-pad: padded K contributes 0 to the dot; padded M/N is sliced off.
    xp = jnp.pad(xf, ((0, M_p - M), (0, K_p - in_dim)))
    w1p = jnp.pad(w1, ((0, K_p - in_dim), (0, N_p - h_dim)))
    w2p = jnp.pad(w2, ((0, K_p - in_dim), (0, N_p - h_dim)))
    b1p = jnp.pad(b1, (0, N_p - h_dim))
    b2p = jnp.pad(b2, (0, N_p - h_dim))

    # Fuse the two projections per N-tile: columns laid out as
    # [W1_tile_0 | W2_tile_0 | W1_tile_1 | W2_tile_1 | ...].
    w_fused = jnp.concatenate(
        [w1p.reshape(K_p, nN, tn_e), w2p.reshape(K_p, nN, tn_e)], axis=-1
    ).reshape(K_p, 2 * N_p)
    b_fused = jnp.concatenate(
        [b1p.reshape(nN, tn_e), b2p.reshape(nN, tn_e)], axis=-1
    ).reshape(1, 2 * N_p)

    bpe = jnp.dtype(x.dtype).itemsize
    # Double-buffered x / fused-weight / bias / out tiles + f32 accumulator.
    vmem_bytes = (
        2 * tm_e * tk_e * bpe
        + 2 * tk_e * 2 * tn_e * bpe
        + 2 * 2 * tn_e * bpe
        + 2 * tm_e * tn_e * bpe
        + tm_e * 2 * tn_e * 4
    )
    # Cap at 56 MiB so the same tiling is safe on v7x (64 MiB physical VMEM).
    vmem_limit = int(min(max(2 * vmem_bytes, 32 * 1024 * 1024),
                         56 * 1024 * 1024))

    cost = pl.CostEstimate(
        flops=2 * M_p * K_p * 2 * N_p + 2 * M_p * N_p,
        transcendentals=M_p * N_p,
        bytes_accessed=(
            M_p * K_p * bpe + K_p * 2 * N_p * bpe + 2 * N_p * bpe
            + M_p * N_p * bpe
        ),
    )

    out = pl.pallas_call(
        _glu_kernel,
        out_shape=jax.ShapeDtypeStruct((M_p, N_p), x.dtype),
        grid_spec=pltpu.PrefetchScalarGridSpec(
            num_scalar_prefetch=0,
            grid=(nM, nN, nK),
            in_specs=[
                pl.BlockSpec((tm_e, tk_e), lambda i, j, k: (i, k)),      # x
                pl.BlockSpec((tk_e, 2 * tn_e), lambda i, j, k: (k, j)),  # [W1|W2]
                pl.BlockSpec((1, 2 * tn_e), lambda i, j, k: (0, j)),     # [b1|b2]
            ],
            out_specs=pl.BlockSpec((tm_e, tn_e), lambda i, j, k: (i, j)),
            scratch_shapes=[pltpu.VMEM((tm_e, 2 * tn_e), jnp.float32)],
        ),
        compiler_params=pltpu.CompilerParams(
            dimension_semantics=("parallel", "parallel", "arbitrary"),
            vmem_limit_bytes=vmem_limit,
        ),
        cost_estimate=cost,
    )(xp, w_fused, b_fused)

    return out[:M, :h_dim].reshape(*lead, h_dim)


if __name__ == "__main__":
    # TODO(synk): dropout is not applied (inference / eval-mode identity).
    def ref_glu(x, w1, b1, w2, b2):
        return jax.nn.sigmoid(x @ w2 + b2) * (x @ w1 + b1)

    key = jax.random.PRNGKey(0)

    # --- Small shapes that exercise the padding path (M=16, 32->48). ---
    batch, seq, in_dim, h_dim = 2, 8, 32, 48
    kx, k1, k2, k3, k4, key = jax.random.split(key, 6)
    x = jax.random.normal(kx, (batch, seq, in_dim), dtype=jnp.float32)
    # Weights pre-transposed relative to torch.nn.Linear: (in_dim, h_dim).
    w1 = jax.random.normal(k1, (in_dim, h_dim), dtype=jnp.float32) * 0.1
    b1 = jax.random.normal(k2, (h_dim,), dtype=jnp.float32) * 0.1
    w2 = jax.random.normal(k3, (in_dim, h_dim), dtype=jnp.float32) * 0.1
    b2 = jax.random.normal(k4, (h_dim,), dtype=jnp.float32) * 0.1

    out = glu_forward(x, w1, b1, w2, b2)
    jax.block_until_ready(out)
    ref = ref_glu(x, w1, b1, w2, b2)
    assert out.shape == (batch, seq, h_dim)
    assert jnp.allclose(out, ref, atol=1e-5, rtol=1e-5), "small-shape mismatch"

    # --- Multi-tile grid (nM=2, nN=2, nK=2): exercises M/N/K tiling + acc. ---
    batch, seq, in_dim, h_dim = 4, 128, 640, 384
    kx, k1, k2, k3, k4, key = jax.random.split(key, 6)
    x = jax.random.normal(kx, (batch, seq, in_dim), dtype=jnp.float32)
    w1 = jax.random.normal(k1, (in_dim, h_dim), dtype=jnp.float32) * 0.05
    b1 = jax.random.normal(k2, (h_dim,), dtype=jnp.float32) * 0.05
    w2 = jax.random.normal(k3, (in_dim, h_dim), dtype=jnp.float32) * 0.05
    b2 = jax.random.normal(k4, (h_dim,), dtype=jnp.float32) * 0.05

    out = glu_forward(x, w1, b1, w2, b2)
    jax.block_until_ready(out)
    ref = ref_glu(x, w1, b1, w2, b2)
    assert out.shape == (batch, seq, h_dim)
    assert jnp.allclose(out, ref, atol=1e-3, rtol=1e-3), "multi-tile mismatch"

    print("KERNEL_OK")
</pallas_src>

<mosaic_0001>
module attributes {stable_mosaic.version = 11 : i64} {
  func.func @_glu_kernel(%arg0: i32, %arg1: i32, %arg2: i32, %arg3: memref<16x128xf32, #tpu.memory_space<vmem>>, %arg4: memref<128x256xf32, #tpu.memory_space<vmem>>, %arg5: memref<1x256xf32, #tpu.memory_space<vmem>>, %arg6: memref<16x128xf32, #tpu.memory_space<vmem>>, %arg7: memref<16x256xf32, #tpu.memory_space<vmem>>) attributes {dimension_semantics = [#tpu.dimension_semantics<parallel>, #tpu.dimension_semantics<parallel>, #tpu.dimension_semantics<arbitrary>], iteration_bounds = array<i64: 1, 1, 1>, scalar_prefetch = 0 : i64, scratch_operands = 1 : i64, tpu.core_type = #tpu.core_type<tc>, window_params = [{transform_indices = @transform_0, window_bounds = array<i64: 16, 128>}, {transform_indices = @transform_1, window_bounds = array<i64: 128, 256>}, {transform_indices = @transform_2, window_bounds = array<i64: 1, 256>}, {transform_indices = @transform_3, window_bounds = array<i64: 16, 128>}]} {
    %c0_i32 = arith.constant 0 : i32
    %0 = arith.cmpi eq, %arg2, %c0_i32 : i32
    %1 = arith.extui %0 : i1 to i32
    %c0_i32_0 = arith.constant 0 : i32
    %2 = arith.cmpi ne, %1, %c0_i32_0 : i32
    scf.if %2 {
      %cst_10 = arith.constant 0.000000e+00 : f32
      %12 = vector.broadcast %cst_10 : f32 to vector<16x256xf32>
      %c0_11 = arith.constant 0 : index
      %c0_12 = arith.constant 0 : index
      %13 = vector.load %arg7[%c0_11, %c0_12] : memref<16x256xf32, #tpu.memory_space<vmem>>, vector<16x256xf32>
      tpu.vector_store %arg7[%c0_11, %c0_12], %12 {strides = array<i32>} : memref<16x256xf32, #tpu.memory_space<vmem>>, vector<16x256xf32>,
    } else {
    }
    %c0 = arith.constant 0 : index
    %c0_1 = arith.constant 0 : index
    %3 = vector.load %arg7[%c0, %c0_1] : memref<16x256xf32, #tpu.memory_space<vmem>>, vector<16x256xf32>
    %c0_2 = arith.constant 0 : index
    %c0_3 = arith.constant 0 : index
    %4 = vector.load %arg3[%c0_2, %c0_3] : memref<16x128xf32, #tpu.memory_space<vmem>>, vector<16x128xf32>
    %c0_4 = arith.constant 0 : index
    %c0_5 = arith.constant 0 : index
    %5 = vector.load %arg4[%c0_4, %c0_5] : memref<128x256xf32, #tpu.memory_space<vmem>>, vector<128x256xf32>
    %cst = arith.constant dense<0.000000e+00> : vector<16x256xf32>
    %6 = tpu.matmul %4, %5, %cst {dimension_numbers = #tpu.dot_dimension_numbers<[1], [0], [0], [1], [0, 0, 1, 1], [], []>} : vector<16x128xf32>, vector<128x256xf32>, vector<16x256xf32> -> vector<16x256xf32>
    %7 = arith.addf %3, %6 : vector<16x256xf32>
    %c0_6 = arith.constant 0 : index
    %c0_7 = arith.constant 0 : index
    %8 = vector.load %arg7[%c0_6, %c0_7] : memref<16x256xf32, #tpu.memory_space<vmem>>, vector<16x256xf32>
    tpu.vector_store %arg7[%c0_6, %c0_7], %7 {strides = array<i32>} : memref<16x256xf32, #tpu.memory_space<vmem>>, vector<16x256xf32>,
    %c0_i32_8 = arith.constant 0 : i32
    %9 = arith.cmpi eq, %arg2, %c0_i32_8 : i32
    %10 = arith.extui %9 : i1 to i32
    %c0_i32_9 = arith.constant 0 : i32
    %11 = arith.cmpi ne, %10, %c0_i32_9 : i32
    scf.if %11 {
      %c0_10 = arith.constant 0 : index
      %c0_11 = arith.constant 0 : index
      %12 = vector.load %arg7[%c0_10, %c0_11] : memref<16x256xf32, #tpu.memory_space<vmem>>, vector<16x256xf32>
      %c0_12 = arith.constant 0 : index
      %c0_13 = arith.constant 0 : index
      %13 = vector.load %arg5[%c0_12, %c0_13] : memref<1x256xf32, #tpu.memory_space<vmem>>, vector<1x256xf32>
      %14 = vector.broadcast %13 : vector<1x256xf32> to vector<16x256xf32>
      %15 = arith.addf %12, %14 : vector<16x256xf32>
      %16 = vector.extract_strided_slice %15 {offsets = [0, 0], sizes = [16, 128], strides = [1, 1]} : vector<16x256xf32> to vector<16x128xf32>
      %17 = vector.extract_strided_slice %15 {offsets = [0, 128], sizes = [16, 128], strides = [1, 1]} : vector<16x256xf32> to vector<16x128xf32>
      %18 = arith.negf %17 : vector<16x128xf32>
      %19 = math.exp %18 : vector<16x128xf32>
      %cst_14 = arith.constant 1.000000e+00 : f32
      %20 = vector.broadcast %cst_14 : f32 to vector<16x128xf32>
      %21 = arith.addf %20, %19 : vector<16x128xf32>
      %22 = arith.divf %20, %21 : vector<16x128xf32>
      %23 = arith.mulf %22, %16 : vector<16x128xf32>
      %c0_15 = arith.constant 0 : index
      %c0_16 = arith.constant 0 : index
      %24 = vector.load %arg6[%c0_15, %c0_16] : memref<16x128xf32, #tpu.memory_space<vmem>>, vector<16x128xf32>
      tpu.vector_store %arg6[%c0_15, %c0_16], %23 {strides = array<i32>} : memref<16x128xf32, #tpu.memory_space<vmem>>, vector<16x128xf32>,
    } else {
    }
    return
  }
  func.func @transform_0(%arg0: i32, %arg1: i32, %arg2: i32) -> (i32, i32) {
    %c0_i32 = arith.constant 0 : i32
    return %arg0, %arg2 : i32, i32
  }
  func.func @transform_1(%arg0: i32, %arg1: i32, %arg2: i32) -> (i32, i32) {
    %c0_i32 = arith.constant 0 : i32
    return %arg2, %arg1 : i32, i32
  }
  func.func @transform_2(%arg0: i32, %arg1: i32, %arg2: i32) -> (i32, i32) {
    %c0_i32 = arith.constant 0 : i32
    %c0_i32_0 = arith.constant 0 : i32
    return %c0_i32, %arg1 : i32, i32
  }
  func.func @transform_3(%arg0: i32, %arg1: i32, %arg2: i32) -> (i32, i32) {
    %c0_i32 = arith.constant 0 : i32
    return %arg0, %arg1 : i32, i32
  }
}

</mosaic_0001>

<bundles_post_ra>
// kernel: glu_forward.1
= control target key start
LH: loop header
LB: loop body
LE: loop exit
PB: predicated region body
PF: predicated region fallthrough
CT: control target
= control target key end

     0   :  { %v247_v3 = vmov 0.0   ;;  %v154_v51 = vlaneseq  ;;  %s379_s1 = inlined_call_operand.vmem [shape: f32[128,256], index: 1, kind: input, shape index: {}]   ;;  %s380_s0 = inlined_call_operand.vmem [shape: f32[16,128], index: 0, kind: input, shape index: {}]   ;;  %s381_s2 = inlined_call_operand.vmem [shape: f32[1,256], index: 2, kind: input, shape index: {}]   ;;  %s382_s3 = inlined_call_operand.vmem [shape: f32[16,128], index: 3, kind: output, shape index: {}]  }
   0x1   :  { %v29_v0 = vld [vmem:[%s379_s1 + $0x8] sm:$0xff]  ;;  %v31_v1 = vld [vmem:[%s379_s1 + $0x18] sm:$0xff]  ;;  %v28_v2 = vld [vmem:[%s379_s1] sm:$0xff]  ;;  %124 = vmatprep.mubr.f32.mxu0 %v247_v3  ;;  %130 = vmatprep.mubr.f32.mxu1 %v247_v3 }
   0x2   :  { %v190_v4 = vpack.c.bf16 %v31_v1, %v29_v0  ;;  %v30_v5 = vld [vmem:[%s379_s1 + $0x10] sm:$0xff]  ;;  %v33_v6 = vld [vmem:[%s379_s1 + $0x28] sm:$0xff]  ;;  %v35_v7 = vld [vmem:[%s379_s1 + $0x38] sm:$0xff]  ;;  %v155_v52 = vshrl.u32 %v154_v51, 7 }
   0x3   :  { %v192_v8 = vpack.c.bf16 %v30_v5, %v28_v2  ;;  %v194_v9 = vpack.c.bf16 %v35_v7, %v33_v6  ;;  %v32_v10 = vld [vmem:[%s379_s1 + $0x20] sm:$0xff]  ;;  %v34_v11 = vld [vmem:[%s379_s1 + $0x30] sm:$0xff]  ;;  %v37_v12 = vld [vmem:[%s379_s1 + $0x48] sm:$0xff] }
   0x4   :  { %191 = vmatprep.subr.bf16.mxu0 %v190_v4  ;;  %222 = vmatprep.subr.bf16.mxu1 %v190_v4  ;;  %v39_v13 = vld [vmem:[%s379_s1 + $0x58] sm:$0xff]  ;;  %v196_v14 = vpack.c.bf16 %v34_v11, %v32_v10  ;;  %v36_v16 = vld [vmem:[%s379_s1 + $0x40] sm:$0xff]  ;;  %v38_v17 = vld [vmem:[%s379_s1 + $0x50] sm:$0xff]  ;;  %v160_v53 = vsub.s32 1, %v155_v52  ;;  %v156_v4 = vsub.s32 0, %v155_v52 }
   0x5   :  { %193 = vmatpush1.bf16.msra.mxu0 %v192_v8  ;;  %230 = vmatpush1.bf16.msra.mxu1 %v192_v8  ;;  %v198_v15 = vpack.c.bf16 %v39_v13, %v37_v12  ;;  %v41_v18 = vld [vmem:[%s379_s1 + $0x68] sm:$0xff]  ;;  %v43_v19 = vld [vmem:[%s379_s1 + $0x78] sm:$0xff]  ;;  %v200_v20 = vpack.c.bf16 %v38_v17, %v36_v16  ;;  %v40_v22 = vld [vmem:[%s379_s1 + $0x60] sm:$0xff] }
   0x6   :  { %195 = vmatprep.subr.bf16.mxu0 %v194_v9  ;;  %223 = vmatprep.subr.bf16.mxu1 %v194_v9  ;;  %v202_v21 = vpack.c.bf16 %v43_v19, %v41_v18  ;;  %v42_v23 = vld [vmem:[%s379_s1 + $0x70] sm:$0xff]  ;;  %v45_v24 = vld [vmem:[%s379_s1 + $0x88] sm:$0xff]  ;;  %v47_v25 = vld [vmem:[%s379_s1 + $0x98] sm:$0xff] }
   0x7   :  { %v204_v26 = vpack.c.bf16 %v42_v23, %v40_v22  ;;  %v206_v27 = vpack.c.bf16 %v47_v25, %v45_v24  ;;  %v44_v28 = vld [vmem:[%s379_s1 + $0x80] sm:$0xff]  ;;  %v46_v29 = vld [vmem:[%s379_s1 + $0x90] sm:$0xff]  ;;  %v49_v30 = vld [vmem:[%s379_s1 + $0xa8] sm:$0xff] }
   0x8   :  { %v51_v31 = vld [vmem:[%s379_s1 + $0xb8] sm:$0xff]  ;;  %v208_v32 = vpack.c.bf16 %v46_v29, %v44_v28  ;;  %v48_v34 = vld [vmem:[%s379_s1 + $0xa0] sm:$0xff]  ;;  %v50_v35 = vld [vmem:[%s379_s1 + $0xb0] sm:$0xff] }
   0x9   :  { %197 = vmatpush1.bf16.msra.mxu0 %v196_v14  ;;  %231 = vmatpush1.bf16.msra.mxu1 %v196_v14  ;;  %v210_v33 = vpack.c.bf16 %v51_v31, %v49_v30  ;;  %v53_v36 = vld [vmem:[%s379_s1 + $0xc8] sm:$0xff]  ;;  %v55_v37 = vld [vmem:[%s379_s1 + $0xd8] sm:$0xff]  ;;  %v212_v38 = vpack.c.bf16 %v50_v35, %v48_v34  ;;  %v52_v40 = vld [vmem:[%s379_s1 + $0xc0] sm:$0xff] }
   0xa   :  { %199 = vmatprep.subr.bf16.mxu0 %v198_v15  ;;  %224 = vmatprep.subr.bf16.mxu1 %v198_v15  ;;  %v214_v39 = vpack.c.bf16 %v55_v37, %v53_v36  ;;  %v54_v41 = vld [vmem:[%s379_s1 + $0xd0] sm:$0xff]  ;;  %v57_v42 = vld [vmem:[%s379_s1 + $0xe8] sm:$0xff]  ;;  %v59_v43 = vld [vmem:[%s379_s1 + $0xf8] sm:$0xff] }
   0xb   :  { %v216_v44 = vpack.c.bf16 %v54_v41, %v52_v40  ;;  %v218_v45 = vpack.c.bf16 %v59_v43, %v57_v42  ;;  %v56_v46 = vld [vmem:[%s379_s1 + $0xe0] sm:$0xff]  ;;  %v58_v47 = vld [vmem:[%s379_s1 + $0xf0] sm:$0xff]  ;;  %v27_v50 = vld [vmem:[%s380_s0 + $0x8] sm:$0xff] }
   0xc   :  { %v220_v48 = vpack.c.bf16 %v58_v47, %v56_v46  ;;  %v26_v49 = vld [vmem:[%s380_s0] sm:$0xff] }
   0xd   :  { %201 = vmatpush1.bf16.msra.mxu0 %v200_v20  ;;  %232 = vmatpush1.bf16.msra.mxu1 %v200_v20  ;;  %v152_v54 = vld [vmem:[%s381_s2] sm:$0x3] }
   0xe   :  { %203 = vmatprep.subr.bf16.mxu0 %v202_v21  ;;  %225 = vmatprep.subr.bf16.mxu1 %v202_v21  ;;  %v161_v55 = vrot.slane %v152_v54, %v160_v53  ;;  %v157_v5 = vrot.slane %v152_v54, %v156_v4 }
  0x11   :  { %205 = vmatpush1.bf16.msra.mxu0 %v204_v26  ;;  %233 = vmatpush1.bf16.msra.mxu1 %v204_v26 }
  0x12   :  { %207 = vmatprep.subr.bf16.mxu0 %v206_v27  ;;  %226 = vmatprep.subr.bf16.mxu1 %v206_v27 }
  0x15   :  { %209 = vmatpush1.bf16.msra.mxu0 %v208_v32  ;;  %234 = vmatpush1.bf16.msra.mxu1 %v208_v32 }
  0x16   :  { %211 = vmatprep.subr.bf16.mxu0 %v210_v33  ;;  %227 = vmatprep.subr.bf16.mxu1 %v210_v33 }
  0x19   :  { %213 = vmatpush1.bf16.msra.mxu0 %v212_v38  ;;  %235 = vmatpush1.bf16.msra.mxu1 %v212_v38 }
  0x1a   :  { %215 = vmatprep.subr.bf16.mxu0 %v214_v39  ;;  %228 = vmatprep.subr.bf16.mxu1 %v214_v39 }
  0x1d   :  { %217 = vmatpush1.bf16.msra.mxu0 %v216_v44  ;;  %236 = vmatpush1.bf16.msra.mxu1 %v216_v44 }
  0x1e   :  { %219 = vmatprep.subr.bf16.mxu0 %v218_v45  ;;  %229 = vmatprep.subr.bf16.mxu1 %v218_v45 }
  0x21   :  { %221 = vmatpush1.bf16.msra.mxu0 %v220_v48  ;;  %237 = vmatpush1.bf16.msra.mxu1 %v220_v48 }
  0x24   :  { %125 = vmatmul.mubr.f32.vlgmr.msra.gmra.mrb[0].mxu0 %v26_v49  ;;  %131 = vmatmul.mubr.f32.vlgmr.msra.gmra.mrb[0].mxu1 %v27_v50 }
  0xf7   :  { %v126_v56 = vpop.f32.mrb[0].mxu0  ;;  %v132_v57 = vpop.f32.mrb[0].mxu1 }
  0xf8   :  { %v128_v58 = vpop.f32.mrb[1].mxu0  ;;  %v134_v59 = vpop.f32.mrb[1].mxu1  ;;  %v164_v6 = vadd.f32 %v157_v5, %v126_v56  ;;  %v166_v8 = vadd.f32 %v157_v5, %v132_v57 }
  0xf9   :  { %v165_v60 = vadd.f32 %v161_v55, %v128_v58  ;;  %v167_v61 = vadd.f32 %v161_v55, %v134_v59 }
  0xfb   :  { %v188_v62 = vmul.f32 -1.442695, %v165_v60  ;;  %v189_v63 = vmul.f32 -1.442695, %v167_v61 }
  0xfd   :  { %239 = vpow2.f32 %v188_v62 }
  0xfe   :  { %241 = vpow2.f32 %v189_v63 }
 0x107   :  { %v240_v0 = vpop.eup %239 }
 0x108   :  { %v242_v1 = vpop.eup %241  ;;  %v174_v2 = vadd.f32 1.0, %v240_v0 }
 0x109   :  { %v175_v3 = vadd.f32 1.0, %v242_v1 }
 0x10a   :  { %243 = vrcp.f32 %v174_v2 }
 0x10b   :  { %245 = vrcp.f32 %v175_v3 }
 0x114   :  { %v244_v7 = vpop.eup %243 }
 0x115   :  { %v246_v9 = vpop.eup %245  ;;  %v180_v10 = vmul.f32 %v244_v7, %v164_v6 }
 0x116   :  { %v181_v11 = vmul.f32 %v246_v9, %v166_v8 }
 0x117   :  { %182 = vst [vmem:[%s382_s3] sm:$0xff] %v180_v10 }
 0x118   :  { %183 = vst [vmem:[%s382_s3 + $0x8] sm:$0xff] %v181_v11 }

</bundles_post_ra>
